<compile_context>
chip_gen: v7x
topology: tpu7x:2x2x1
jax: 0.10.0
libtpu: 0.0.40
codegen_flags: <defaults>
</compile_context>

<pallas_src>
import functools

import jax
import jax.numpy as jnp
from jax import lax
from jax.experimental import pallas as pl
from jax.experimental.pallas import tpu as pltpu


def _per_channel_kernel(x_ref, w_ref, b_ref, o_ref, *, eps):
    # num_groups == num_channels: no cross-channel mixing. Stats are kept
    # (TB, C, 1) so channels stay on sublanes and the broadcast over L is a
    # cheap lane broadcast (no lane->sublane relayout).
    x = x_ref[...].astype(jnp.float32)                         # (TB, C, L)
    mean = jnp.mean(x, axis=-1, keepdims=True)                 # (TB, C, 1)
    sq_mean = jnp.mean(x * x, axis=-1, keepdims=True)          # (TB, C, 1)
    inv_std = lax.rsqrt(sq_mean - mean * mean + eps)           # (TB, C, 1)
    w = w_ref[...][None, :, :]                                 # (1, C, 1)
    b = b_ref[...][None, :, :]                                 # (1, C, 1)
    scale = w * inv_std                                        # (TB, C, 1)
    shift = b - scale * mean                                   # (TB, C, 1)
    o_ref[...] = (x * scale + shift).astype(o_ref.dtype)


def _grouped_kernel(x_ref, gmat_ref, w_ref, b_ref, o_ref, *, eps):
    # General case: group-average both stats with ONE fused MXU matmul
    # against a block-diagonal (C, C) averaging matrix (1/cpg within group).
    x = x_ref[...].astype(jnp.float32)                         # (TB, C, L)
    tb = x.shape[0]
    mean = jnp.mean(x, axis=-1)                                # (TB, C)
    sq_mean = jnp.mean(x * x, axis=-1)                         # (TB, C)
    stats = jnp.concatenate([mean, sq_mean], axis=0)           # (2*TB, C)
    g_stats = jnp.dot(stats, gmat_ref[...],
                      preferred_element_type=jnp.float32)      # (2*TB, C)
    g_mean = g_stats[:tb, :]                                   # (TB, C)
    g_sq_mean = g_stats[tb:, :]                                # (TB, C)
    inv_std = lax.rsqrt(g_sq_mean - g_mean * g_mean + eps)     # (TB, C)
    scale = w_ref[...] * inv_std                               # (TB, C)
    shift = b_ref[...] - scale * g_mean                        # (TB, C)
    o_ref[...] = (x * scale[:, :, None] + shift[:, :, None]).astype(o_ref.dtype)


def _choose_batch_tile(B, C, L, elem_bytes, block_budget_bytes=2 << 20):
    """Largest TB with one (TB, C, L) block <= ~block_budget_bytes, with at
    least 2 grid steps when B >= 2 (feeds both v7x TensorCores)."""
    per_batch = max(1, C * L * elem_bytes)
    tb = max(1, block_budget_bytes // per_batch)
    if B >= 2:
        tb = min(tb, pl.cdiv(B, 2))
    return int(min(tb, B))


def group_norm_1d(x, weight, bias, num_groups=None, eps=1e-5):
    """x: (B, C, L); weight/bias: (C, 1) as in the torch module."""
    if x.ndim != 3:
        raise ValueError(
            f"GroupNorm1D requires 3-dimensional input, received {x.ndim}")
    B, C, L = x.shape
    num_groups = num_groups or C
    if C % num_groups:
        raise ValueError("num_groups must be a factor of num_channels")
    cpg = C // num_groups

    elem_bytes = jnp.dtype(x.dtype).itemsize
    tb = _choose_batch_tile(B, C, L, elem_bytes)
    grid = (pl.cdiv(B, tb),)   # ragged last block handled by masked writeback

    # 2x in + 2x out buffering of a <=2 MiB block plus f32 temporaries and the
    # resident gmat/w/b stays well under 32 MiB on every generation (v7x has
    # 64 MiB physical); this also lifts v5e's 16 MiB default scoped limit.
    compiler_params = pltpu.CompilerParams(
        dimension_semantics=("parallel",),
        vmem_limit_bytes=32 << 20,
    )
    x_spec = pl.BlockSpec((tb, C, L), lambda i: (i, 0, 0))
    out_spec = pl.BlockSpec((tb, C, L), lambda i: (i, 0, 0))
    out_shape = jax.ShapeDtypeStruct((B, C, L), x.dtype)

    if cpg == 1:
        # Module-default path: pure per-channel normalization, no matmul.
        w = weight.reshape(C, 1).astype(jnp.float32)
        b = bias.reshape(C, 1).astype(jnp.float32)
        kernel = functools.partial(_per_channel_kernel, eps=eps)
        return pl.pallas_call(
            kernel,
            out_shape=out_shape,
            grid_spec=pltpu.PrefetchScalarGridSpec(
                num_scalar_prefetch=0,
                grid=grid,
                in_specs=[
                    x_spec,
                    pl.BlockSpec((C, 1), lambda i: (0, 0)),
                    pl.BlockSpec((C, 1), lambda i: (0, 0)),
                ],
                out_specs=out_spec,
            ),
            compiler_params=compiler_params,
        )(x, w, b)

    # Block-diagonal group-averaging matrix (C, C): 1/cpg within each group.
    ch = jnp.arange(C)
    same_group = (ch[:, None] // cpg) == (ch[None, :] // cpg)
    gmat = same_group.astype(jnp.float32) / float(cpg)
    w = weight.reshape(1, C).astype(jnp.float32)
    b = bias.reshape(1, C).astype(jnp.float32)
    kernel = functools.partial(_grouped_kernel, eps=eps)
    return pl.pallas_call(
        kernel,
        out_shape=out_shape,
        grid_spec=pltpu.PrefetchScalarGridSpec(
            num_scalar_prefetch=0,
            grid=grid,
            in_specs=[
                x_spec,
                pl.BlockSpec((C, C), lambda i: (0, 0)),
                pl.BlockSpec((1, C), lambda i: (0, 0)),
                pl.BlockSpec((1, C), lambda i: (0, 0)),
            ],
            out_specs=out_spec,
        ),
        compiler_params=compiler_params,
    )(x, gmat, w, b)


def _reference(x, weight, bias, num_groups, eps=1e-5):
    # Pure-JAX port of the torch forward for correctness check.
    B, C, L = x.shape
    cpg = C // num_groups
    mean = x.mean(-1)                       # (B, C)
    sq_mean = (x ** 2).mean(-1)             # (B, C)
    mean_g = mean.reshape(B, num_groups, cpg).mean(-1, keepdims=True)
    sq_g = sq_mean.reshape(B, num_groups, cpg).mean(-1, keepdims=True)
    mean = jnp.broadcast_to(mean_g, (B, num_groups, cpg)).reshape(B, C, 1)
    sq_mean = jnp.broadcast_to(sq_g, (B, num_groups, cpg)).reshape(B, C, 1)
    std = (sq_mean - mean ** 2 + eps) ** 0.5
    scale = weight.reshape(1, C, 1) / std
    shift = bias.reshape(1, C, 1) - scale * mean
    return shift + x * scale


if __name__ == "__main__":
    key = jax.random.PRNGKey(0)
    k1, k2, k3, kw, kb = jax.random.split(key, 5)

    # --- Case 1: grouped channels (cpg=2), ragged batch (partial block). ---
    B, C, L = 3, 8, 256
    num_groups = 4
    x1 = jax.random.normal(k1, (B, C, L), dtype=jnp.float32)
    w1 = jnp.ones((C, 1), dtype=jnp.float32)
    b1 = jnp.zeros((C, 1), dtype=jnp.float32)
    out1 = jax.block_until_ready(group_norm_1d(x1, w1, b1, num_groups))
    ref1 = _reference(x1, w1, b1, num_groups)
    assert out1.shape == (B, C, L)
    assert jnp.allclose(out1, ref1, atol=1e-4, rtol=1e-4), "case1 mismatch"

    # --- Case 2: num_groups == num_channels (default path), even batch. ----
    B2, C2, L2 = 4, 8, 256
    x2 = jax.random.normal(k2, (B2, C2, L2), dtype=jnp.float32) * 2.0 + 0.5
    w2 = 1.0 + 0.1 * jax.random.normal(kw, (C2, 1), dtype=jnp.float32)
    b2 = 0.1 * jax.random.normal(kb, (C2, 1), dtype=jnp.float32)
    out2 = jax.block_until_ready(group_norm_1d(x2, w2, b2, None))
    ref2 = _reference(x2, w2, b2, C2)
    assert out2.shape == (B2, C2, L2)
    assert jnp.allclose(out2, ref2, atol=1e-4, rtol=1e-4), "case2 mismatch"

    # --- Case 3: per-channel path, ragged batch (partial block). -----------
    B3, C3, L3 = 3, 16, 384
    x3 = jax.random.normal(k3, (B3, C3, L3), dtype=jnp.float32)
    w3 = jnp.ones((C3, 1), dtype=jnp.float32)
    b3 = jnp.zeros((C3, 1), dtype=jnp.float32)
    out3 = jax.block_until_ready(group_norm_1d(x3, w3, b3, C3))
    ref3 = _reference(x3, w3, b3, C3)
    assert out3.shape == (B3, C3, L3)
    assert jnp.allclose(out3, ref3, atol=1e-4, rtol=1e-4), "case3 mismatch"

    print("KERNEL_OK")
</pallas_src>

<mosaic_0001>
module attributes {stable_mosaic.version = 11 : i64} {
  func.func @_grouped_kernel(%arg0: i32, %arg1: memref<2x8x256xf32, #tpu.memory_space<vmem>>, %arg2: memref<8x8xf32, #tpu.memory_space<vmem>>, %arg3: memref<1x8xf32, #tpu.memory_space<vmem>>, %arg4: memref<1x8xf32, #tpu.memory_space<vmem>>, %arg5: memref<2x8x256xf32, #tpu.memory_space<vmem>>) attributes {dimension_semantics = [#tpu.dimension_semantics<parallel>], iteration_bounds = array<i64: 2>, scalar_prefetch = 0 : i64, scratch_operands = 0 : i64, tpu.core_type = #tpu.core_type<tc>, window_params = [{transform_indices = @transform_0, window_bounds = array<i64: 2, 8, 256>}, {pipeline_mode = #tpu.pipeline_mode<synchronous>, transform_indices = @transform_1, window_bounds = array<i64: 8, 8>}, {pipeline_mode = #tpu.pipeline_mode<synchronous>, transform_indices = @transform_2, window_bounds = array<i64: 1, 8>}, {pipeline_mode = #tpu.pipeline_mode<synchronous>, transform_indices = @transform_3, window_bounds = array<i64: 1, 8>}, {transform_indices = @transform_4, window_bounds = array<i64: 2, 8, 256>}]} {
    %c0 = arith.constant 0 : index
    %c0_0 = arith.constant 0 : index
    %c0_1 = arith.constant 0 : index
    %0 = vector.load %arg1[%c0, %c0_0, %c0_1] : memref<2x8x256xf32, #tpu.memory_space<vmem>>, vector<2x8x256xf32>
    %cst = arith.constant dense<0.000000e+00> : vector<2x8xf32>
    %1 = vector.multi_reduction <add>, %0, %cst [2] : vector<2x8x256xf32> to vector<2x8xf32>
    %cst_2 = arith.constant 2.560000e+02 : f32
    %2 = vector.broadcast %cst_2 : f32 to vector<2x8xf32>
    %3 = arith.divf %1, %2 : vector<2x8xf32>
    %4 = arith.mulf %0, %0 : vector<2x8x256xf32>
    %cst_3 = arith.constant dense<0.000000e+00> : vector<2x8xf32>
    %5 = vector.multi_reduction <add>, %4, %cst_3 [2] : vector<2x8x256xf32> to vector<2x8xf32>
    %cst_4 = arith.constant 2.560000e+02 : f32
    %6 = vector.broadcast %cst_4 : f32 to vector<2x8xf32>
    %7 = arith.divf %5, %6 : vector<2x8xf32>
    %8 = tpu.concatenate %3, %7 in 0 : vector<2x8xf32>, vector<2x8xf32> -> vector<4x8xf32>
    %c0_5 = arith.constant 0 : index
    %c0_6 = arith.constant 0 : index
    %9 = vector.load %arg2[%c0_5, %c0_6] : memref<8x8xf32, #tpu.memory_space<vmem>>, vector<8x8xf32>
    %cst_7 = arith.constant dense<0.000000e+00> : vector<4x8xf32>
    %10 = tpu.matmul %8, %9, %cst_7 {dimension_numbers = #tpu.dot_dimension_numbers<[1], [0], [0], [1], [0, 0, 1, 1], [], []>} : vector<4x8xf32>, vector<8x8xf32>, vector<4x8xf32> -> vector<4x8xf32>
    %11 = vector.extract_strided_slice %10 {offsets = [0, 0], sizes = [2, 8], strides = [1, 1]} : vector<4x8xf32> to vector<2x8xf32>
    %12 = vector.extract_strided_slice %10 {offsets = [2, 0], sizes = [2, 8], strides = [1, 1]} : vector<4x8xf32> to vector<2x8xf32>
    %13 = arith.mulf %11, %11 : vector<2x8xf32>
    %14 = arith.subf %12, %13 : vector<2x8xf32>
    %cst_8 = arith.constant 9.99999974E-6 : f32
    %15 = vector.broadcast %cst_8 : f32 to vector<2x8xf32>
    %16 = arith.addf %14, %15 : vector<2x8xf32>
    %17 = math.rsqrt %16 : vector<2x8xf32>
    %c0_9 = arith.constant 0 : index
    %c0_10 = arith.constant 0 : index
    %18 = vector.load %arg3[%c0_9, %c0_10] : memref<1x8xf32, #tpu.memory_space<vmem>>, vector<1x8xf32>
    %19 = vector.broadcast %18 : vector<1x8xf32> to vector<2x8xf32>
    %20 = arith.mulf %19, %17 : vector<2x8xf32>
    %c0_11 = arith.constant 0 : index
    %c0_12 = arith.constant 0 : index
    %21 = vector.load %arg4[%c0_11, %c0_12] : memref<1x8xf32, #tpu.memory_space<vmem>>, vector<1x8xf32>
    %22 = arith.mulf %20, %11 : vector<2x8xf32>
    %23 = vector.broadcast %21 : vector<1x8xf32> to vector<2x8xf32>
    %24 = arith.subf %23, %22 : vector<2x8xf32>
    %25 = vector.shape_cast %20 : vector<2x8xf32> to vector<2x8x1xf32>
    %26 = vector.broadcast %25 : vector<2x8x1xf32> to vector<2x8x256xf32>
    %27 = arith.mulf %0, %26 : vector<2x8x256xf32>
    %28 = vector.shape_cast %24 : vector<2x8xf32> to vector<2x8x1xf32>
    %29 = vector.broadcast %28 : vector<2x8x1xf32> to vector<2x8x256xf32>
    %30 = arith.addf %27, %29 : vector<2x8x256xf32>
    %c0_13 = arith.constant 0 : index
    %c0_14 = arith.constant 0 : index
    %c0_15 = arith.constant 0 : index
    %31 = vector.load %arg5[%c0_13, %c0_14, %c0_15] : memref<2x8x256xf32, #tpu.memory_space<vmem>>, vector<2x8x256xf32>
    tpu.vector_store %arg5[%c0_13, %c0_14, %c0_15], %30 {strides = array<i32>} : memref<2x8x256xf32, #tpu.memory_space<vmem>>, vector<2x8x256xf32>,
    return
  }
  func.func @transform_0(%arg0: i32) -> (i32, i32, i32) {
    %c0_i32 = arith.constant 0 : i32
    %c0_i32_0 = arith.constant 0 : i32
    %c0_i32_1 = arith.constant 0 : i32
    return %arg0, %c0_i32, %c0_i32_0 : i32, i32, i32
  }
  func.func @transform_1(%arg0: i32) -> (i32, i32) {
    %c0_i32 = arith.constant 0 : i32
    %c0_i32_0 = arith.constant 0 : i32
    %c0_i32_1 = arith.constant 0 : i32
    return %c0_i32, %c0_i32_0 : i32, i32
  }
  func.func @transform_2(%arg0: i32) -> (i32, i32) {
    %c0_i32 = arith.constant 0 : i32
    %c0_i32_0 = arith.constant 0 : i32
    %c0_i32_1 = arith.constant 0 : i32
    return %c0_i32, %c0_i32_0 : i32, i32
  }
  func.func @transform_3(%arg0: i32) -> (i32, i32) {
    %c0_i32 = arith.constant 0 : i32
    %c0_i32_0 = arith.constant 0 : i32
    %c0_i32_1 = arith.constant 0 : i32
    return %c0_i32, %c0_i32_0 : i32, i32
  }
  func.func @transform_4(%arg0: i32) -> (i32, i32, i32) {
    %c0_i32 = arith.constant 0 : i32
    %c0_i32_0 = arith.constant 0 : i32
    %c0_i32_1 = arith.constant 0 : i32
    return %arg0, %c0_i32, %c0_i32_0 : i32, i32, i32
  }
}

</mosaic_0001>

<bundles_post_ra>
// kernel: tpu_custom_call.1
= control target key start
LH: loop header
LB: loop body
LE: loop exit
PB: predicated region body
PF: predicated region fallthrough
CT: control target
= control target key end

     0   :  { %9 = vsyncpa [#allocation3], 0  ;;  %s1061_s0 = inlined_call_operand.hbm [shape: f32[3,8,256], index: 0, kind: input, shape index: {}]   ;;  %s1062_s1 = inlined_call_operand.hbm [shape: f32[8,8], index: 1, kind: input, shape index: {}]   ;;  %s1063_s2 = inlined_call_operand.vmem [shape: f32[1,8], index: 2, kind: input, shape index: {}]   ;;  %s1064_s3 = inlined_call_operand.vmem [shape: f32[1,8], index: 3, kind: input, shape index: {}]   ;;  %s1065_s4 = inlined_call_operand.hbm [shape: f32[3,8,256], index: 4, kind: output, shape index: {}]  }
   0x1   :  { %11 = vsyncpa [#allocation3 + $0x1], 0 }
   0x2   :  { %12 = vsyncpa [#allocation6], 0 }
   0x3   :  { %13 = vsyncpa [#allocation4], 0 }
   0x4   :  { %15 = vsyncpa [#allocation4 + $0x1], 0  ;;  %s815_s15 = smov 0   ;;  %s817_s16 = smov 0  }
   0x5   :  { %s819_s17 = smov 0   ;;  %s821_s18 = smov 0  }
   0x6 LB: > { %s836_s19 = sadd.s32 4294967295, %s779_s18   ;;  %s551_s20 = sadd.s32 4294967294, %s779_s18   ;;  %s779_s18 = sphi %s821_s18, %s1085_s18   ;;  %s775_s17 = sphi %s819_s17, %s1084_s17   ;;  %s771_s16 = sphi %s817_s16, %s1083_s16   ;;  %s767_s15 = sphi %s815_s15, %s1082_s15  }
   0x7   : > { %s840_s21 = sadd.s32 1, %s779_s18   ;;  %s28_s22 = sadd.s32 1, %s775_s17 }
   0x8   : > { %s25_s23 = ssub.s32 %s779_s18, %s840_s21  ;;  %p35_p0 = scmp.ne.s32.totalorder %s775_s17, %s771_s16 }
   0x9   : > { %p26_p1 = scmp.eq.s32.totalorder %s25_s23, 0  ;;  %p36_p2 = scmp.eq.s32.totalorder %s779_s18, 0 }
   0xa   : > { %p41_p3 = scmp.ne.s32.totalorder %s771_s16, %s767_s15  ;;  %p1066_p4 = scmp.eq.s32.totalorder %s836_s19, 0 }
   0xb   : > { %s852_s24 = scalar_select %p26_p1, %s775_s17, %s28_s22  }
   0xc   : > { %p854_p5 = por %p36_p2, %p35_p0  ;;  %p860_p6 = por %p1066_p4, %p41_p3 }
   0xd   : > { %p128_p7 = scmp.eq.s32.totalorder %s836_s19, 1  ;;  %p134_p8 = scmp.eq.s32.totalorder %s551_s20, 1 }
   0xe   : > { %s1069_s25 = scalar_select %p854_p5, 1, 0 }
   0xf   : > { %s1070_s26 = scalar_select %p860_p6, 1, 0 }
  0x10   : > { %p552_p9 = scmp.ge.s32.totalorder %s779_s18, 1  ;;  %p141_p10 = scmp.lt.s32.totalorder %s779_s18, 3 }
  0x11   : > { %p867_p11 = por %p128_p7, %p35_p0  ;;  %p871_p12 = por %p134_p8, %p41_p3 }
  0x12   : > { %p875_p13 = pnand %p552_p9, %p141_p10  ;;  %s781_s30 = smov [#allocation5]  }
  0x13   : > { %s1071_s27 = scalar_select %p867_p11, 1, 0 }
  0x14   : > { %s1072_s28 = scalar_select %p871_p12, 1, 0 }
  0x15   : > { %s1073_s29 = scalar_select %p875_p13, 1, 0 }
  0x16   : > { %p601_p1 = pneg %p875_p13  ;;  %s154_s5 = sshll.u32 %s781_s30, 4  ;;  %s155_s5 = int_to_ptr.vmem [resolvable:$true] %s154_s5 }
  0x17   : > { %s653_s9 = scalar_lea.hbm %s1062_s1, 128 }
  0x18   : > { %p883_p2 = pnand %p601_p1, %p1066_p4  ;;  %p654_p0 = scmp.ne.s32.totalorder %s1062_s1, %s653_s9 }
  0x19   : > { %p660_p9 = scmp.lt.u32.totalorder %s653_s9, %s1062_s1 }
  0x1a   : > { %p655_p3 = pneg %p883_p2 }
  0x1c   : > { %p656_p7 = pnand %p655_p3, %p654_p0 }
  0x1e   : > { %p657_p8 = pneg %p656_p7 }
  0x20   : > { %p662_p10 = pnand %p660_p9, %p657_p8 }
  0x22   : > { %665 = shalt.err (!%p662_p10)
}
  0x23   : > { %s666_s14 = scalar_lea.vmem %s155_s5, 128  ;;  %p674_p11 = scmp.lt.s32.totalorder %s155_s5, %s155_s5 }
  0x24   : > { %p667_p1 = scmp.ne.s32.totalorder %s155_s5, %s666_s14  ;;  %p675_p6 = scmp.lt.s32.totalorder %s666_s14, %s666_s14 }
  0x26   : > { %p669_p4 = pnand %p667_p1, %p655_p3  ;;  %p676_p13 = por %p675_p6, %p674_p11 }
  0x28   : > { %p670_p12 = pneg %p669_p4 }
  0x2a   : > { %p677_p5 = pnand %p676_p13, %p670_p12 }
  0x2c   : > { %680 = shalt.err (!%p677_p5)
}
  0x2d   : > { %604 = dma.hbm_to_vmem [thread:$0]  (!%p883_p2), %s1062_s1, 128, %s155_s5, [#allocation6]  }
  0x2e   : > { %p554_p0 = scmp.ge.s32.totalorder %s779_s18, 2 }
  0x2f   : > { %p1075_p7 = scmp.ne.s32.totalorder (!%p554_p0), %s1069_s25, 0 }
  0x30   : > { %167 = sbr.rel (%p554_p0) target bundleno = 90 (0x5a), region = 28 }
  0x37   : > { %170 = sbr.rel (!%p1075_p7) target bundleno = 90 (0x5a), region = 32  ;;  %s171_s23 = sand.u32 (%p1075_p7), 1, %s775_s17  }
  0x38   : > { %s556_s30 = sshll.u32 (%p1075_p7), %s779_s18, 1  ;;  %s555_s7 = sshll.u32 (%p1075_p7), %s171_s23, 5 }
  0x39   : > { %s177_s8 = ssub.s32 (%p1075_p7), 3, %s556_s30  ;;  %s913_s9 = scalar_lea.sflag (%p1075_p7), [#allocation3], %s171_s23 }
  0x3a   : > { %p178_p4 = scmp.lt.s32.totalorder (%p1075_p7), %s177_s8, 2  ;;  %s175_s10 = scalar_lea.vmem (%p1075_p7), [#allocation2], %s555_s7 }
  0x3e   : > { %s1087_s8 = smov (!%p178_p4, %s177_s8), 2 }
  0x3f   : > { %s910_s6 = sshll.u32 %s1087_s8, 8 }
  0x40   : > { %s183_s5 = ssub.s32 512, %s910_s6 }
  0x41   : > { %184 = vsyncadd %s913_s9, %s183_s5  ;;  %p559_p5 = scmp.ne.s32.totalorder %s910_s6, 0  ;;  %s584_s25 = sshll.u32 %s779_s18, 9 }
  0x42   : > { %s921_s13 = scalar_lea.hbm %s1061_s0, %s584_s25  ;;  %s190_s14 = sshll.u32 %s175_s10, 4  ;;  %s923_s14 = int_to_ptr.vmem [resolvable:$true] %s190_s14 }
  0x43   : > { %s681_s20 = scalar_lea.hbm %s921_s13, %s910_s6  ;;  %s685_s30 = scalar_lea.hbm %s1061_s0, 768 }
  0x44   : > { %p682_p6 = scmp.ne.s32.totalorder %s921_s13, %s681_s20  ;;  %p686_p13 = scmp.lt.u32.totalorder %s921_s13, %s1061_s0 }
  0x45   : > { %p687_p2 = scmp.lt.u32.totalorder %s685_s30, %s681_s20  ;;  %p689_p8 = scmp.lt.u32.totalorder %s681_s20, %s921_s13 }
  0x46   : > { %p683_p11 = pnand %p682_p6, %p559_p5 }
  0x47   : > { %p688_p3 = por %p687_p2, %p686_p13 }
  0x48   : > { %p684_p12 = pneg %p683_p11 }
  0x49   : > { %p690_p9 = por %p689_p8, %p688_p3 }
  0x4b   : > { %p691_p10 = pnand %p690_p9, %p684_p12 }
  0x4d   : > { %694 = shalt.err (!%p691_p10)
}
  0x4e   : > { %s695_s5 = scalar_lea.vmem %s923_s14, %s910_s6  ;;  %s782_s10 = smov [#allocation2]  }
  0x4f   : > { %p696_p1 = scmp.ne.s32.totalorder %s923_s14, %s695_s5  ;;  %s699_s25 = sshll.u32 %s782_s10, 4  ;;  %s700_s25 = int_to_ptr.vmem [resolvable:$false] %s699_s25 }
  0x50   : > { %s701_s11 = scalar_lea.vmem %s700_s25, 1024  ;;  %p702_p6 = scmp.lt.s32.totalorder %s923_s14, %s700_s25 }
  0x51   : > { %p697_p7 = pnand %p696_p1, %p559_p5  ;;  %p703_p11 = scmp.lt.s32.totalorder %s701_s11, %s695_s5 }
  0x53   : > { %p698_p4 = pneg %p697_p7  ;;  %p704_p13 = por %p703_p11, %p702_p6 }
  0x55   : > { %p705_p2 = pnand %p704_p13, %p698_p4 }
  0x57   : > { %708 = shalt.err (!%p705_p2)
}
  0x58   : > { %s783_s12 = smov 256   ;;  %s784_s20 = smov 16  }
  0x59   : > { %196 = dma.hbm_to_vmem [thread:$0]  (%p559_p5), %s921_s13, %s910_s6, %s923_s14, %s913_s9, %s783_s12, %s783_s12, %s784_s20  }
  0x5a PF: > { %p1076_p12 = scmp.ne.s32.totalorder %s1073_s29, 0 }
  0x5b   : > { %s953_s22 = sand.u32 (!%p1076_p12), 1, %s771_s16   ;;  %p1077_p3 = scmp.ne.s32.totalorder (!%p1076_p12), %s1070_s26, 0 }
  0x5c   : > { %202 = sbr.rel (%p1076_p12) target bundleno = 649 (0x289), region = 36  ;;  %s565_s23 = sshll.u32 (!%p1076_p12), %s953_s22, 5 }
  0x5d   : > { %s205_s30 = scalar_lea.sflag (!%p1076_p12), [#allocation3], %s953_s22  ;;  %s208_s7 = scalar_lea.vmem (!%p1076_p12), [#allocation2], %s565_s23 }
  0x63   : > { %754 = dma.done.wait (%p1077_p3), %s205_s30, 512  }
  0x64   : > { %756 = vsyncadd (%p1077_p3), %s205_s30, 4294966784  ;;  %p1078_p5 = scmp.eq.s32.totalorder %s836_s19, 0 }
  0x66   : > { %758 = dma.done.wait (%p1078_p5), [#allocation6], 128   ;;  %p1079_p8 = pmov %p1078_p5 }
  0x67   : > { %v967_v0 = vld [vmem:[%s208_s7] sm:$0xff]  ;;  %v969_v1 = vld [vmem:[%s208_s7 + $0x8] sm:$0xff]  ;;  %v971_v2 = vld [vmem:[%s208_s7 + $0x10] sm:$0xff]  ;;  %v785_v13 = vmov 0.0   ;;  %vm786_vm0 = vmmov 0   ;;  %v276_v14 = vlaneseq  ;;  %vm286_vm1 = vcmask 1041409  }
  0x68   : > { %760 = vsyncadd (%p1079_p8), [#allocation6], 4294967168  ;;  %v253_v3 = vadd.f32 %v969_v1, %v967_v0  ;;  %v262_v4 = vmul.f32 %v967_v0, %v967_v0  ;;  %v263_v5 = vmul.f32 %v969_v1, %v969_v1  ;;  %v979_v6 = vld [vmem:[%s208_s7 + $0x18] sm:$0xff]  ;;  %v264_v7 = vmul.f32 %v971_v2, %v971_v2  ;;  %v304_v12 = vld [vmem:[#allocation5] sm:$0xff]  ;;  %590 = vmatprep.subr.mxu0 %v785_v13  ;;  %s236_s13 = scalar_lea.vmem [#allocation7], %s565_s23  ;;  %s447_s14 = scalar_lea.sflag [#allocation4], %s953_s22 }
  0x69   : > { %v265_v8 = vmul.f32 %v979_v6, %v979_v6  ;;  %v256_v10 = vadd.f32 %v979_v6, %v971_v2  ;;  %592 = vmatprep.mubr.msk.f32.mxu0 %vm786_vm0, %v785_v13  ;;  %591 = vmatpush3.msra.mxu0 %v304_v12  ;;  %v277_v16 = vand.u32 127, %v276_v14  ;;  %v279_v17 = vshrl.u32 %v276_v14, 7  ;;  %v569_v39 = vld [vmem:[%s1063_s2] ss:$0 sm:$0xff]  ;;  %p1080_p9 = scmp.ne.s32.totalorder %s1071_s27, 0 }
  0x6a   : > { %254 = vadd.xlane.f32.xlu0 %v253_v3  ;;  %v266_v9 = vadd.f32 %v263_v5, %v262_v4  ;;  %vm299_vm2 = vcmask 1043459   ;;  %vm302_vm3 = vcmask 1041408   ;;  %vm305_vm4 = vcmask 64512   ;;  %v570_v45 = vld [vmem:[%s1064_s3] ss:$0 sm:$0xff]  ;;  %s572_s8 = sshll.u32 (%p1080_p9), %s836_s19, 1 }
  0x6b   : > { %v269_v11 = vadd.f32 %v265_v8, %v264_v7  ;;  %v280_v20 = vsub.s32 %v277_v16, %v279_v17  ;;  %v415_v40 = vsub.s32 3, %v279_v17  ;;  %v408_v41 = vsub.s32 2, %v279_v17  ;;  %s455_s5 = ssub.s32 (%p1080_p9), 3, %s572_s8 }
  0x6c   : > { %267 = vadd.xlane.f32.xlu1 %v266_v9  ;;  %p456_p10 = scmp.lt.s32.totalorder (%p1080_p9), %s455_s5, 2 }
  0x6e   : > { %257 = vadd.xlane.f32.xlu0 %v256_v10 }
  0x70   : > { %270 = vadd.xlane.f32.xlu1 %v269_v11 }
  0xf7   : > { %v255_v15 = vpop.xlane.xlu0 %254 }
  0xf8   : > { %v260_v21 = vmul.f32 0.00390625, %v255_v15 }
  0xf9   : > { %v268_v18 = vpop.xlane.xlu1 %267 }
  0xfa   : > { %v272_v22 = vmul.f32 0.00390625, %v268_v18  ;;  %v281_v27 = vrot.slane %v260_v21, %v280_v20 }
  0xfb   : > { %v258_v19 = vpop.xlane.xlu0 %257 }
  0xfc   : > { %v261_v23 = vmul.f32 0.00390625, %v258_v19  ;;  %v294_v28 = vrot.slane %v272_v22, %v280_v20 }
  0xfd   : > { %v271_v24 = vpop.xlane.xlu1 %270 }
  0xfe   : > { %v285_v25 = vrot.slane %v261_v23, %v280_v20  ;;  %v273_v26 = vmul.f32 0.00390625, %v271_v24 }
 0x100   : > { %v298_v29 = vrot.slane %v273_v26, %v280_v20  ;;  %v287_v30 = vsel %vm286_vm1, %v285_v25, %v281_v27 }
 0x102   : > { %v300_v31 = vsel %vm299_vm2, %v298_v29, %v294_v28 }
 0x103   : > { %v303_v32 = vsel %vm302_vm3, %v287_v30, %v300_v31 }
 0x104   : > { %593 = vmatmul.mubr.msk.f32.vlgmr.msra.gmra.mrb[0].mxu0 %vm305_vm4, %v303_v32 }
 0x1d7   : > { %v375_v33 = vpop.f32.mrb[0].mxu0 }
 0x1d8   : > { %v379_v34 = vmul.f32 %v375_v33, %v375_v33  ;;  %v594_v35 = vpop.f32.mrb[1].mxu0  ;;  %v396_v43 = vrot.slane %v375_v33, 6 }
 0x1da   : > { %v381_v36 = vrot.slane %v379_v34, 6 }
 0x1dc   : > { %v383_v37 = vsub.f32 %v375_v33, %v381_v36 }
 0x1de   : > { %v384_v38 = vadd.f32 1e-05, %v383_v37 }
 0x1e0   : > { %651 = vrsqrt.f32 %v384_v38 }
 0x1ea   : > { %v652_v42 = vpop.eup %651 }
 0x1eb   : > { %v393_v44 = vmul.f32 %v652_v42, %v569_v39 }
 0x1ed   : > { %v416_v46 = vrot.slane %v393_v44, %v415_v40  ;;  %v409_v47 = vrot.slane %v393_v44, %v408_v41  ;;  %v398_v48 = vmul.f32 %v396_v43, %v393_v44 }
 0x1ef   : > { %418 = vbcast.lane.b32.xlu1 %v416_v46, 256  ;;  %411 = vbcast.lane.b32.xlu0 %v409_v47, 256  ;;  %v405_v49 = vsub.f32 %v570_v45, %v398_v48 }
 0x1f1   : > { %v427_v50 = vrot.slane %v405_v49, %v408_v41  ;;  %v434_v51 = vrot.slane %v405_v49, %v415_v40 }
 0x1f3   : > { %429 = vbcast.lane.b32.xlu1 %v427_v50, 256 }
 0x1f7   : > { %436 = vbcast.lane.b32.xlu1 %v434_v51, 256 }
 0x261   : > { %v419_v52 = vpop.permute.xlu1 %418  ;;  %v412_v53 = vpop.permute.xlu0 %411 }
 0x262   : > { %v420_v54 = vmul.f32 %v412_v53, %v967_v0  ;;  %v421_v55 = vmul.f32 %v412_v53, %v969_v1  ;;  %v422_v59 = vmul.f32 %v419_v52, %v971_v2  ;;  %v423_v60 = vmul.f32 %v419_v52, %v979_v6 }
 0x265   : > { %v430_v56 = vpop.permute.xlu1 %429 }
 0x266   : > { %v438_v57 = vadd.f32 %v430_v56, %v420_v54  ;;  %v439_v58 = vadd.f32 %v430_v56, %v421_v55  ;;  %453 = sbr.rel (!%p1080_p9) target bundleno = 649 (0x289), region = 48 }
 0x268   : > { %442 = vst [vmem:[%s236_s13] sm:$0xff] %v438_v57  ;;  %443 = vst [vmem:[%s236_s13 + $0x8] sm:$0xff] %v439_v58 }
 0x269   : > { %v437_v61 = vpop.permute.xlu1 %436 }
 0x26a   : > { %v440_v62 = vadd.f32 %v437_v61, %v422_v59  ;;  %v441_v63 = vadd.f32 %v437_v61, %v423_v60 }
 0x26c   : > { %444 = vst [vmem:[%s236_s13 + $0x10] sm:$0xff] %v440_v62  ;;  %445 = vst [vmem:[%s236_s13 + $0x18] sm:$0xff] %v441_v63 }
 0x26d   : > { %s1089_s5 = smov (!%p456_p10, %s455_s5), 2 }
 0x26e   : > { %s1003_s10 = sshll.u32 %s1089_s5, 8 }
 0x26f   : > { %s461_s25 = ssub.s32 512, %s1003_s10 }
 0x270   : > { %462 = vsyncadd %s447_s14, %s461_s25  ;;  %p575_p1 = scmp.ne.s32.totalorder %s1003_s10, 0  ;;  %s587_s11 = sshll.u32 %s836_s19, 9 }
 0x271   : > { %s1013_s20 = scalar_lea.hbm %s1065_s4, %s587_s11  ;;  %s468_s23 = sshll.u32 %s236_s13, 4  ;;  %s1015_s23 = int_to_ptr.vmem [resolvable:$true] %s468_s23 }
 0x272   : > { %s709_s30 = scalar_lea.vmem %s1015_s23, %s1003_s10  ;;  %s787_s7 = smov [#allocation7]  }
 0x273   : > { %p710_p7 = scmp.ne.s32.totalorder %s1015_s23, %s709_s30  ;;  %s713_s26 = sshll.u32 %s787_s7, 4  ;;  %s714_s26 = int_to_ptr.vmem [resolvable:$false] %s713_s26 }
 0x274   : > { %s715_s19 = scalar_lea.vmem %s714_s26, 1024  ;;  %p716_p11 = scmp.lt.s32.totalorder %s1015_s23, %s714_s26 }
 0x275   : > { %p711_p4 = pnand %p710_p7, %p575_p1  ;;  %p717_p13 = scmp.lt.s32.totalorder %s715_s19, %s709_s30 }
 0x277   : > { %p712_p6 = pneg %p711_p4  ;;  %p718_p2 = por %p717_p13, %p716_p11 }
 0x279   : > { %p719_p12 = pnand %p718_p2, %p712_p6 }
 0x27b   : > { %722 = shalt.err (!%p719_p12)
}
 0x27c   : > { %s723_s29 = scalar_lea.hbm %s1013_s20, %s1003_s10  ;;  %s727_s13 = scalar_lea.hbm %s1065_s4, 768 }
 0x27d   : > { %p724_p3 = scmp.ne.s32.totalorder %s1013_s20, %s723_s29  ;;  %p728_p9 = scmp.lt.u32.totalorder %s1013_s20, %s1065_s4 }
 0x27e   : > { %p729_p10 = scmp.lt.u32.totalorder %s727_s13, %s723_s29  ;;  %p731_p4 = scmp.lt.u32.totalorder %s723_s29, %s1013_s20 }
 0x27f   : > { %p725_p5 = pnand %p724_p3, %p575_p1 }
 0x280   : > { %p730_p7 = por %p729_p10, %p728_p9 }
 0x281   : > { %p726_p8 = pneg %p725_p5 }
 0x282   : > { %p732_p6 = por %p731_p4, %p730_p7 }
 0x284   : > { %p733_p11 = pnand %p732_p6, %p726_p8 }
 0x286   : > { %736 = shalt.err (!%p733_p11)
}
 0x287   : > { %s788_s25 = smov 256   ;;  %s789_s11 = smov 16  }
 0x288   : > { %474 = dma.vmem_to_hbm [thread:$0]  (%p575_p1), %s1015_s23, %s1003_s10, %s1013_s20, %s447_s14, %s788_s25, %s788_s25, %s789_s11  }
 0x289 PF: > { %s483_s27 = sand.u32 1, %s767_s15   ;;  %p1081_p13 = scmp.ne.s32.totalorder %s1072_s28, 0 }
 0x28a   : > { %s484_s12 = scalar_lea.sflag [#allocation4], %s483_s27 }
 0x28b   : > { %p606_p2 = pnand %p554_p0, %p1081_p13 }
 0x28d   : > { %762 = dma.done.wait (!%p606_p2), %s484_s12, 512  }
 0x28e   : > { %764 = vsyncadd (!%p606_p2), %s484_s12, 4294966784  ;;  %p18_p12 = scmp.ge.s32.totalorder %s840_s21, 4   ;;  %s1082_s15 = smov %s771_s16 }
 0x28f   : > { %s1083_s16 = smov %s775_s17  ;;  %s1084_s17 = smov %s852_s24 }
 0x290   : > { %s1085_s18 = smov %s840_s21  ;;  %20 = sbr.rel (!%p18_p12) target bundleno = 6 (0x6), region = 85 }
 0x297   :  { %489 = vsyncpa [#allocation3], 1 }
 0x298   :  { %491 = vsyncpa [#allocation3 + $0x1], 1 }
 0x299   :  { %492 = vsyncpa [#allocation6], 1 }
 0x29a   :  { %493 = vsyncpa [#allocation4], 1 }
 0x29b   :  { %495 = vsyncpa [#allocation4 + $0x1], 1 }

</bundles_post_ra>
